<compile_context>
chip_gen: v7x
topology: tpu7x:2x2x1
jax: 0.10.0
libtpu: 0.0.40
codegen_flags: <defaults>
</compile_context>

<pallas_src>
import jax
import jax.numpy as jnp
from jax import lax
from jax.experimental import pallas as pl
from jax.experimental.pallas import tpu as pltpu

ALPHA = 0.1
EPSILON = 1e-8
_LANE = 128


# --------------------------------------------------------------------------- #
# Generation-aware VMEM sizing.
# --------------------------------------------------------------------------- #
def _tpu_vmem_capacity_bytes():
    try:
        return int(pltpu.get_tpu_info().vmem_capacity_bytes)
    except Exception:
        return 64 << 20            # conservative fallback (v7x per-TC VMEM)


def _scoped_vmem_cap():
    # ~3/4 of physical VMEM: ~48 MiB on v7x (64 MiB), ~96 MiB on v5e/v6e (128 MiB).
    return (3 * _tpu_vmem_capacity_bytes()) // 4


def _vmem_limit_bytes(working_bytes):
    return int(min(max(int(working_bytes) + (4 << 20), 16 << 20), _scoped_vmem_cap()))


# --------------------------------------------------------------------------- #
# Small-input fast path: whole (T, N) array resident in VMEM, single fused pass.
# --------------------------------------------------------------------------- #
def _make_resident_kernel(n_true):
    def kernel(losses_ref, run_std_ref, out_ref, new_std_ref):
        x = losses_ref[...]                                          # (T, N) f32
        mean = jnp.mean(x, axis=1, keepdims=True)                    # (T, 1)
        diff = x - mean
        var = jnp.sum(diff * diff, axis=1, keepdims=True) / float(n_true - 1)
        std = jnp.sqrt(var)                                          # torch .std(): ddof=1
        new_std = (1.0 - ALPHA) * run_std_ref[...] + ALPHA * std
        new_std_ref[...] = new_std
        inv = 1.0 / (new_std + EPSILON)                              # (T, 1)
        out_ref[...] = jnp.sum(x * inv, axis=0, keepdims=True)       # (1, N)
    return kernel


def _normalized_loss_resident(losses, run_std_col):
    t, n = losses.shape
    # ~3-4x the array is live (x, diff, x*inv) plus outputs.
    work_bytes = (4 * t * n + n + 8 * t) * 4
    out, new_std = pl.pallas_call(
        _make_resident_kernel(n),
        out_shape=(
            jax.ShapeDtypeStruct((1, n), jnp.float32),
            jax.ShapeDtypeStruct((t, 1), jnp.float32),
        ),
        in_specs=[
            pl.BlockSpec(memory_space=pltpu.MemorySpace.VMEM),
            pl.BlockSpec(memory_space=pltpu.MemorySpace.VMEM),
        ],
        out_specs=(
            pl.BlockSpec(memory_space=pltpu.MemorySpace.VMEM),
            pl.BlockSpec(memory_space=pltpu.MemorySpace.VMEM),
        ),
        compiler_params=pltpu.CompilerParams(
            vmem_limit_bytes=_vmem_limit_bytes(work_bytes)),
        cost_estimate=pl.CostEstimate(
            flops=int(7 * t * n),
            transcendentals=int(t),
            bytes_accessed=int((t * n + n + 2 * t) * 4)),
    )(losses, run_std_col)
    return out[0], new_std[:, 0]


# --------------------------------------------------------------------------- #
# Streaming path.
# Pass A: per-range per-task (mean, M2) partials via Chan's combine.
# --------------------------------------------------------------------------- #
def _make_stats_kernel(n_true, tile_n, num_tiles, tiles_per_range):
    needs_mask = (n_true % tile_n) != 0
    last = num_tiles - 1

    def kernel(losses_ref, mean_out_ref, m2_out_ref, mean_ref, m2_ref):
        r = pl.program_id(0)                       # range index ("parallel")
        j = pl.program_id(1)                       # tile within range ("arbitrary")
        g = r * tiles_per_range + j                # global tile index

        @pl.when(j == 0)
        def _init():
            mean_ref[...] = jnp.zeros_like(mean_ref)
            m2_ref[...] = jnp.zeros_like(m2_ref)

        x = losses_ref[...]                        # (T, TILE_N)

        def accum(mask, tile_cnt):
            # All prior tiles within this range are full (only the global-last
            # tile can be partial, and it is the last non-empty tile overall).
            prior_cnt = (j * tile_n).astype(jnp.float32)
            xs = x if mask is None else jnp.where(mask, x, 0.0)
            tile_mean = jnp.sum(xs, axis=1, keepdims=True) / tile_cnt   # (T, 1)
            diff = x - tile_mean
            if mask is not None:
                diff = jnp.where(mask, diff, 0.0)
            tile_m2 = jnp.sum(diff * diff, axis=1, keepdims=True)       # (T, 1)
            # Chan's parallel-variance combine (no E[x^2]-E[x]^2 cancellation).
            tot = prior_cnt + tile_cnt
            delta = tile_mean - mean_ref[...]
            mean_ref[...] = mean_ref[...] + delta * (tile_cnt / tot)
            m2_ref[...] = (m2_ref[...] + tile_m2
                           + (delta * delta) * (prior_cnt * tile_cnt / tot))

        if needs_mask:
            # Only the boundary tile pays for the mask; interior tiles are a
            # pure unmasked HBM stream (keeps pass A HBM-bound on v7x).
            @pl.when(g == last)
            def _boundary():
                col = last * tile_n + lax.broadcasted_iota(jnp.int32, x.shape, 1)
                accum(col < n_true, float(n_true - last * tile_n))

            @pl.when(g < last)
            def _interior():
                accum(None, float(tile_n))
        else:
            @pl.when(g <= last)                    # g > last: empty padded tile, skip
            def _full():
                accum(None, float(tile_n))

        @pl.when(j == tiles_per_range - 1)
        def _finalize():
            mean_out_ref[0] = mean_ref[...]
            m2_out_ref[0] = m2_ref[...]

    return kernel


# --------------------------------------------------------------------------- #
# Pass B: normalize by 1/(new_std + eps) and sum over tasks.
# --------------------------------------------------------------------------- #
def _normalize_kernel(new_std_ref, losses_ref, out_ref):
    # Exact divide: O(T) per tile, fully hidden under the HBM stream.
    inv = 1.0 / (new_std_ref[...] + EPSILON)                         # (T, 1)
    out_ref[...] = jnp.sum(losses_ref[...] * inv, axis=0, keepdims=True)  # (1, TILE_N)
    # TODO(synk): for T >= ~16 on v7x this could be a (1,T)@(T,TILE_N) MXU dot.


def _pick_tile_n(t, n, tile_n=None, target_bytes=2 << 20):
    # Aim for ~2 MiB per streamed block so per-grid-step overhead amortizes.
    if tile_n is None:
        tile_n = max(_LANE, ((target_bytes // (4 * t)) // _LANE) * _LANE)
    else:
        tile_n = max(_LANE, (int(tile_n) // _LANE) * _LANE)
    n_up = pl.cdiv(n, _LANE) * _LANE
    return int(min(tile_n, n_up))


def _normalized_loss_tiled(losses, running_std, tile_n):
    t, n = losses.shape
    tile_n = _pick_tile_n(t, n, tile_n)
    num_tiles = pl.cdiv(n, tile_n)

    # Shard pass A over 2 contiguous N-ranges -> both v7x TensorCores; no-op
    # cost on single-TC v5e/v6e.
    num_ranges = 2 if num_tiles >= 4 else 1
    tiles_per_range = pl.cdiv(num_tiles, num_ranges)

    block_bytes = t * tile_n * 4
    vmem_limit = _vmem_limit_bytes(6 * block_bytes)   # double-buffered blocks + slack

    # ---- Pass A: streamed per-range stats (no wrapper pad; boundary masked). --
    mean_parts, m2_parts = pl.pallas_call(
        _make_stats_kernel(n, tile_n, num_tiles, tiles_per_range),
        out_shape=(
            jax.ShapeDtypeStruct((num_ranges, t, 1), jnp.float32),
            jax.ShapeDtypeStruct((num_ranges, t, 1), jnp.float32),
        ),
        grid=(num_ranges, tiles_per_range),
        in_specs=[
            pl.BlockSpec(
                (t, tile_n),
                lambda r, j: (0, jnp.minimum(r * tiles_per_range + j, num_tiles - 1))),
        ],
        out_specs=(
            pl.BlockSpec((1, t, 1), lambda r, j: (r, 0, 0)),
            pl.BlockSpec((1, t, 1), lambda r, j: (r, 0, 0)),
        ),
        scratch_shapes=[
            pltpu.VMEM((t, 1), jnp.float32),   # running per-range mean
            pltpu.VMEM((t, 1), jnp.float32),   # running per-range M2
        ],
        compiler_params=pltpu.CompilerParams(
            dimension_semantics=("parallel", "arbitrary"),
            vmem_limit_bytes=vmem_limit),
        cost_estimate=pl.CostEstimate(
            flops=int(5 * t * n),
            transcendentals=0,
            bytes_accessed=int((t * n + 2 * t * num_ranges) * 4)),
    )(losses)

    # ---- Final Chan combine across ranges + sqrt + EMA (T scalars, plain JAX). --
    counts = []
    for r in range(num_ranges):
        start = r * tiles_per_range * tile_n
        end = min(n, (r + 1) * tiles_per_range * tile_n)
        counts.append(float(max(0, end - start)))

    mean = mean_parts[0, :, 0]
    m2 = m2_parts[0, :, 0]
    total = counts[0]
    for r in range(1, num_ranges):
        cnt = counts[r]
        if cnt == 0.0:
            continue
        tot = total + cnt
        delta = mean_parts[r, :, 0] - mean
        mean = mean + delta * (cnt / tot)
        m2 = m2 + m2_parts[r, :, 0] + delta * delta * (total * cnt / tot)
        total = tot

    std = jnp.sqrt(m2 / float(n - 1))            # global unbiased (N - 1) divisor
    new_std = (1.0 - ALPHA) * running_std + ALPHA * std

    # ---- Pass B: normalize + sum over tasks; independent tiles -> "parallel". --
    out = pl.pallas_call(
        _normalize_kernel,
        out_shape=jax.ShapeDtypeStruct((1, n), jnp.float32),
        grid=(num_tiles,),
        in_specs=[
            pl.BlockSpec((t, 1), lambda j: (0, 0)),
            pl.BlockSpec((t, tile_n), lambda j: (0, j)),
        ],
        out_specs=pl.BlockSpec((1, tile_n), lambda j: (0, j)),
        compiler_params=pltpu.CompilerParams(
            dimension_semantics=("parallel",),
            vmem_limit_bytes=vmem_limit),
        cost_estimate=pl.CostEstimate(
            flops=int(2 * t * n + t),
            transcendentals=0,
            bytes_accessed=int((t * n + n + t) * 4)),
    )(new_std.reshape(t, 1), losses)

    return out[0], new_std


# --------------------------------------------------------------------------- #
# Public entry point.
# --------------------------------------------------------------------------- #
def normalized_loss(losses, running_std, *, tile_n=None, resident_bytes_limit=None):
    """Returns (sum of normalized task losses, shape (N,); updated running_std, shape (T,))."""
    losses = jnp.asarray(losses, jnp.float32)
    running_std = jnp.asarray(running_std, jnp.float32)
    t, n = losses.shape

    if n <= 1:
        # PyTorch degenerate case: loss.numel() <= 1 -> loss_std = 1.0 (plain JAX).
        new_std = (1.0 - ALPHA) * running_std + ALPHA * 1.0
        out = jnp.sum(losses / (new_std[:, None] + EPSILON), axis=0)
        return out, new_std

    if resident_bytes_limit is None:
        # Resident kernel holds ~3x the array live (x, diff, x*inv):
        # ~24 MiB of input on v5e/v6e (128 MiB VMEM), ~12 MiB on v7x (64 MiB).
        resident_bytes_limit = _scoped_vmem_cap() // 4

    if t * n * 4 <= resident_bytes_limit:
        return _normalized_loss_resident(losses, running_std.reshape(t, 1))
    return _normalized_loss_tiled(losses, running_std, tile_n)


def _reference(losses, running_std):
    """Pure-JAX re-implementation of the PyTorch forward for verification."""
    std = jnp.std(losses, axis=1, ddof=1)                  # torch default: unbiased
    new_std = (1.0 - ALPHA) * running_std + ALPHA * std
    normalized = losses / (new_std[:, None] + EPSILON)
    return jnp.sum(normalized, axis=0), new_std


if __name__ == "__main__":
    key = jax.random.PRNGKey(0)
    k1, k2, k3 = jax.random.split(key, 3)

    # Case 1: small (num_tasks=4, 256 elements/task) -> VMEM-resident fused path.
    t1, n1 = 4, 256
    losses1 = jax.random.uniform(k1, (t1, n1), dtype=jnp.float32) * 2.0
    rstd1 = jnp.ones((t1,), dtype=jnp.float32)             # __init__: torch.ones(num_tasks)
    out1, std1 = normalized_loss(losses1, rstd1)
    jax.block_until_ready((out1, std1))
    ref_out1, ref_std1 = _reference(losses1, rstd1)
    assert jnp.allclose(out1, ref_out1, rtol=1e-4, atol=1e-4), "resident output mismatch"
    assert jnp.allclose(std1, ref_std1, rtol=1e-4, atol=1e-4), "resident running_std mismatch"

    # Case 2: ragged N, multiple tiles, two pass-A ranges (forced small tile /
    # resident_bytes_limit=0 to exercise the streaming kernels + boundary mask
    # + empty padded tile + wrapper Chan combine).
    t2, n2 = 4, 2500
    losses2 = jax.random.uniform(k2, (t2, n2), dtype=jnp.float32) * 2.0
    rstd2 = jnp.full((t2,), 0.5, dtype=jnp.float32)
    out2, std2 = normalized_loss(losses2, rstd2, tile_n=512, resident_bytes_limit=0)
    jax.block_until_ready((out2, std2))
    ref_out2, ref_std2 = _reference(losses2, rstd2)
    assert jnp.allclose(out2, ref_out2, rtol=1e-4, atol=1e-4), "tiled output mismatch"
    assert jnp.allclose(std2, ref_std2, rtol=1e-4, atol=1e-4), "tiled running_std mismatch"

    # Case 3: streaming path with auto tile sizing (single boundary tile, 1 range).
    t3, n3 = 2, 1000
    losses3 = jax.random.uniform(k3, (t3, n3), dtype=jnp.float32) * 3.0 - 1.0
    rstd3 = jnp.ones((t3,), dtype=jnp.float32)
    out3, std3 = normalized_loss(losses3, rstd3, resident_bytes_limit=0)
    jax.block_until_ready((out3, std3))
    ref_out3, ref_std3 = _reference(losses3, rstd3)
    assert jnp.allclose(out3, ref_out3, rtol=1e-4, atol=1e-4), "auto-tile output mismatch"
    assert jnp.allclose(std3, ref_std3, rtol=1e-4, atol=1e-4), "auto-tile running_std mismatch"

    print("KERNEL_OK")
</pallas_src>

<mosaic_0001>
module attributes {stable_mosaic.version = 11 : i64} {
  func.func @kernel(%arg0: memref<4x256xf32, #tpu.memory_space<vmem>>, %arg1: memref<4x1xf32, #tpu.memory_space<vmem>>, %arg2: memref<1x256xf32, #tpu.memory_space<vmem>>, %arg3: memref<4x1xf32, #tpu.memory_space<vmem>>) attributes {dimension_semantics = [], scalar_prefetch = 0 : i64, scratch_operands = 0 : i64, tpu.core_type = #tpu.core_type<tc>} {
    %c0 = arith.constant 0 : index
    %c0_0 = arith.constant 0 : index
    %0 = vector.load %arg0[%c0, %c0_0] : memref<4x256xf32, #tpu.memory_space<vmem>>, vector<4x256xf32>
    %cst = arith.constant dense<0.000000e+00> : vector<4xf32>
    %1 = vector.multi_reduction <add>, %0, %cst [1] : vector<4x256xf32> to vector<4xf32>
    %2 = vector.shape_cast %1 : vector<4xf32> to vector<4x1xf32>
    %cst_1 = arith.constant 2.560000e+02 : f32
    %3 = vector.broadcast %cst_1 : f32 to vector<4x1xf32>
    %4 = arith.divf %2, %3 : vector<4x1xf32>
    %5 = vector.broadcast %4 : vector<4x1xf32> to vector<4x256xf32>
    %6 = arith.subf %0, %5 : vector<4x256xf32>
    %7 = arith.mulf %6, %6 : vector<4x256xf32>
    %cst_2 = arith.constant dense<0.000000e+00> : vector<4xf32>
    %8 = vector.multi_reduction <add>, %7, %cst_2 [1] : vector<4x256xf32> to vector<4xf32>
    %9 = vector.shape_cast %8 : vector<4xf32> to vector<4x1xf32>
    %cst_3 = arith.constant 2.550000e+02 : f32
    %10 = vector.broadcast %cst_3 : f32 to vector<4x1xf32>
    %11 = arith.divf %9, %10 : vector<4x1xf32>
    %12 = math.sqrt %11 : vector<4x1xf32>
    %c0_4 = arith.constant 0 : index
    %c0_5 = arith.constant 0 : index
    %13 = vector.load %arg1[%c0_4, %c0_5] : memref<4x1xf32, #tpu.memory_space<vmem>>, vector<4x1xf32>
    %cst_6 = arith.constant 0.899999976 : f32
    %14 = vector.broadcast %cst_6 : f32 to vector<4x1xf32>
    %15 = arith.mulf %14, %13 : vector<4x1xf32>
    %cst_7 = arith.constant 1.000000e-01 : f32
    %16 = vector.broadcast %cst_7 : f32 to vector<4x1xf32>
    %17 = arith.mulf %16, %12 : vector<4x1xf32>
    %18 = arith.addf %15, %17 : vector<4x1xf32>
    %c0_8 = arith.constant 0 : index
    %c0_9 = arith.constant 0 : index
    %19 = vector.load %arg3[%c0_8, %c0_9] : memref<4x1xf32, #tpu.memory_space<vmem>>, vector<4x1xf32>
    tpu.vector_store %arg3[%c0_8, %c0_9], %18 {strides = array<i32>} : memref<4x1xf32, #tpu.memory_space<vmem>>, vector<4x1xf32>,
    %cst_10 = arith.constant 9.99999993E-9 : f32
    %20 = vector.broadcast %cst_10 : f32 to vector<4x1xf32>
    %21 = arith.addf %18, %20 : vector<4x1xf32>
    %cst_11 = arith.constant 1.000000e+00 : f32
    %22 = vector.broadcast %cst_11 : f32 to vector<4x1xf32>
    %23 = arith.divf %22, %21 : vector<4x1xf32>
    %24 = vector.broadcast %23 : vector<4x1xf32> to vector<4x256xf32>
    %25 = arith.mulf %0, %24 : vector<4x256xf32>
    %cst_12 = arith.constant dense<0.000000e+00> : vector<256xf32>
    %26 = vector.multi_reduction <add>, %25, %cst_12 [0] : vector<4x256xf32> to vector<256xf32>
    %27 = vector.shape_cast %26 : vector<256xf32> to vector<1x256xf32>
    %c0_13 = arith.constant 0 : index
    %c0_14 = arith.constant 0 : index
    %28 = vector.load %arg2[%c0_13, %c0_14] : memref<1x256xf32, #tpu.memory_space<vmem>>, vector<1x256xf32>
    tpu.vector_store %arg2[%c0_13, %c0_14], %27 {strides = array<i32>} : memref<1x256xf32, #tpu.memory_space<vmem>>, vector<1x256xf32>,
    return
  }
}

</mosaic_0001>

<bundles_post_ra>
// kernel: tpu_custom_call.1
= control target key start
LH: loop header
LB: loop body
LE: loop exit
PB: predicated region body
PF: predicated region fallthrough
CT: control target
= control target key end

     0   :  { %9 = vsyncpa [#allocation3], 0  ;;  %s270_s0 = inlined_call_operand.hbm [shape: f32[4,256], index: 0, kind: input, shape index: {}]   ;;  %s271_s1 = inlined_call_operand.vmem [shape: f32[4,1], index: 1, kind: input, shape index: {}]   ;;  %s272_s2 = inlined_call_operand.hbm [shape: f32[1,256], index: 2, kind: output, shape index: {0}]   ;;  %s273_s3 = inlined_call_operand.vmem [shape: f32[4,1], index: 3, kind: output, shape index: {1}]  }
   0x1   :  { %10 = vsyncpa [#allocation4], 0  ;;  %s207_s12 = smov [#allocation2]   ;;  %s159_s16 = scalar_lea.hbm %s270_s0, 128 }
   0x2   :  { %s17_s13 = sshll.u32 %s207_s12, 4  ;;  %p160_p0 = scmp.ne.s32.totalorder %s270_s0, %s159_s16  ;;  %s18_s13 = int_to_ptr.vmem [resolvable:$true] %s17_s13 }
   0x3   :  { %p163_p1 = scmp.lt.u32.totalorder %s159_s16, %s270_s0 }
   0x5   :  { %p165_p2 = pnand %p163_p1, %p160_p0 }
   0x7   :  { %168 = shalt.err (!%p165_p2)
}
   0x8   :  { %s169_s21 = scalar_lea.vmem %s18_s13, 128  ;;  %p174_p4 = scmp.lt.s32.totalorder %s18_s13, %s18_s13 }
   0x9   :  { %p170_p3 = scmp.ne.s32.totalorder %s18_s13, %s169_s21  ;;  %p175_p5 = scmp.lt.s32.totalorder %s169_s21, %s169_s21 }
   0xb   :  { %p176_p6 = por %p175_p5, %p174_p4 }
   0xd   :  { %p177_p7 = pnand %p176_p6, %p170_p3 }
   0xf   :  { %180 = shalt.err (!%p177_p7)
}
  0x10   :  { %20 = dma.hbm_to_vmem [thread:$0]  %s270_s0, 128, %s18_s13, [#allocation3]  }
  0x11   :  { %203 = dma.done.wait [#allocation3], 128  }
  0x12   :  { %204 = vsyncadd [#allocation3], 4294967168  ;;  %vm30_vm0 = vcmask 1043456   ;;  %v26_v0 = vld [vmem:[#allocation2] sm:$0xff]  ;;  %v208_v5 = vmov 839922192   ;;  %v42_v7 = vlaneseq }
  0x13   :  { %v28_v1 = vcombine.high %v26_v0, %v26_v0  ;;  %v31_v2 = vsel %vm30_vm0, %v26_v0, 0.0  ;;  %v40_v6 = vunpack.c.l.s4 %v208_v5  ;;  %v209_v20 = vmov 0   ;;  %v66_v24 = vld [vmem:[%s271_s1] sm:$0xf]  ;;  %s211_s1 = smov [#allocation5]  }
  0x14   :  { %v43_v9 = vshrl.u32 %v42_v7, 7  ;;  %152 = vset.pattern.permute.xlu1 %v209_v20  ;;  %153 = vset.pattern.permute.xlu0 %v209_v20  ;;  %v67_v28 = vmul.f32 0.9, %v66_v24  ;;  %vm70_vm3 = vcmask 3072   ;;  %v210_v45 = vmov 1966171168  }
  0x15   :  { %v32_v3 = vsel %vm30_vm0, %v28_v1, 0.0  ;;  %v41_v8 = vunpack.c.0.s8 %v40_v6  ;;  %v109_v46 = vunpack.c.l.s4 %v210_v45  ;;  %vm125_vm4 = vcmp.lt.s32.totalorder %v42_v7, 256 }
  0x16   :  { %v33_v4 = vadd.f32 %v32_v3, %v31_v2 }
  0x17   :  { %v44_v10 = vsub.s32 %v41_v8, %v43_v9  ;;  %v110_v51 = vunpack.c.0.s8 %v109_v46 }
  0x18   :  { %34 = vadd.xlane.f32.xlu0 %v33_v4 }
  0x19   :  { %v113_v55 = vsub.s32 %v110_v51, %v43_v9 }
  0xa5   :  { %v35_v11 = vpop.xlane.xlu0 %34 }
  0xa6   :  { %v37_v12 = vmul.f32 0.00390625, %v35_v11 }
  0xa8   :  { %v45_v13 = vrot.slane %v37_v12, %v44_v10 }
  0xaa   :  { %v47_v14 = vsub.f32 %v26_v0, %v45_v13 }
  0xac   :  { %v48_v15 = vmul.f32 %v47_v14, %v47_v14 }
  0xae   :  { %v50_v16 = vcombine.high %v48_v15, %v48_v15  ;;  %v52_v17 = vsel %vm30_vm0, %v48_v15, 0.0 }
  0xb0   :  { %v53_v18 = vsel %vm30_vm0, %v50_v16, 0.0 }
  0xb1   :  { %v54_v19 = vadd.f32 %v53_v18, %v52_v17 }
  0xb3   :  { %55 = vadd.xlane.f32.xlu0 %v54_v19 }
 0x140   :  { %v56_v21 = vpop.xlane.xlu0 %55 }
 0x141   :  { %v58_v22 = vmul.f32 0.003921569, %v56_v21 }
 0x143   :  { %155 = vrsqrt.f32 %v58_v22  ;;  %vm61_vm1 = vcmp.eq.f32.partialorder %v58_v22, inf  ;;  %v64_v26 = vand.u32 2147483648, %v58_v22  ;;  %vm63_vm2 = vcmp.eq.f32.partialorder %v58_v22, 0.0 }
 0x14d   :  { %v156_v23 = vpop.eup %155 }
 0x14e   :  { %v60_v25 = vmul.f32 %v156_v23, %v58_v22 }
 0x150   :  { %v62_v27 = vsel %vm61_vm1, %v58_v22, %v60_v25 }
 0x151   :  { %v65_v29 = vsel %vm63_vm2, %v64_v26, %v62_v27 }
 0x152   :  { %v68_v30 = vmul.f32 0.1, %v65_v29 }
 0x154   :  { %v69_v31 = vadd.f32 %v68_v30, %v67_v28 }
 0x156   :  { %v72_v32 = vadd.f32 1e-08, %v69_v31  ;;  %71 = vst.msk [vmem:[%s273_s3] sm:$0xf] %vm70_vm3, %v69_v31  ;;  %s134_s3 = sshll.u32 %s211_s1, 4  ;;  %s135_s3 = int_to_ptr.vmem [resolvable:$true] %s134_s3 }
 0x157   :  { %s181_s27 = scalar_lea.vmem %s135_s3, 32  ;;  %p186_p9 = scmp.lt.s32.totalorder %s135_s3, %s135_s3 }
 0x158   :  { %157 = vrcp.f32 %v72_v32  ;;  %p182_p8 = scmp.ne.s32.totalorder %s135_s3, %s181_s27  ;;  %p187_p10 = scmp.lt.s32.totalorder %s181_s27, %s181_s27 }
 0x15a   :  { %p188_p11 = por %p187_p10, %p186_p9 }
 0x15c   :  { %p189_p12 = pnand %p188_p11, %p182_p8 }
 0x162   :  { %v158_v33 = vpop.eup %157 }
 0x163   :  { %77 = vperm.xlu1 %152, %v158_v33  }
 0x1e2   :  { %v78_v34 = vpop.permute.xlu1 %77 }
 0x1e3   :  { %v85_v35 = vrot.slane %v78_v34, %v44_v10 }
 0x1e5   :  { %v87_v36 = vmul.f32 %v85_v35, %v26_v0 }
 0x1e7   :  { %v89_v37 = vcombine.high %v87_v36, %v87_v36  ;;  %v91_v38 = vsel %vm30_vm0, %v87_v36, 0.0 }
 0x1e8   :  { %v92_v39 = vrot.slane %v91_v38, 4 }
 0x1e9   :  { %v98_v40 = vsel %vm30_vm0, %v89_v37, 0.0 }
 0x1ea   :  { %v93_v41 = vadd.f32 %v92_v39, %v91_v38  ;;  %v99_v42 = vrot.slane %v98_v40, 4 }
 0x1ec   :  { %v94_v43 = vrot.slane %v93_v41, 2  ;;  %v100_v44 = vadd.f32 %v99_v42, %v98_v40 }
 0x1ee   :  { %v95_v47 = vadd.f32 %v94_v43, %v93_v41  ;;  %v101_v48 = vrot.slane %v100_v44, 2 }
 0x1f0   :  { %v96_v49 = vrot.slane %v95_v47, 1  ;;  %v102_v50 = vadd.f32 %v101_v48, %v100_v44 }
 0x1f2   :  { %v103_v52 = vrot.slane %v102_v50, 1  ;;  %v97_v53 = vadd.f32 %v96_v49, %v95_v47 }
 0x1f4   :  { %v104_v54 = vadd.f32 %v103_v52, %v102_v50 }
 0x1f6   :  { %v107_v56 = vcombine.low %v97_v53, %v104_v54 }
 0x1f8   :  { %v114_v57 = vrot.slane %v107_v56, %v113_v55 }
 0x1fa   :  { %v121_v58 = vrot.slane %v114_v57, %v113_v55 }
 0x1fc   :  { %127 = vst.msk [vmem:[#allocation5] sm:$0x3] %vm125_vm4, %v121_v58 }
 0x1fd   :  { %192 = shalt.err (!%p189_p12)
}
 0x1fe   :  { %s193_s30 = scalar_lea.hbm %s272_s2, 32 }
 0x1ff   :  { %p194_p13 = scmp.ne.s32.totalorder %s272_s2, %s193_s30  ;;  %p197_p0 = scmp.lt.u32.totalorder %s193_s30, %s272_s2 }
 0x201   :  { %p199_p1 = pnand %p197_p0, %p194_p13 }
 0x203   :  { %202 = shalt.err (!%p199_p1)
}
 0x204   :  { %137 = dma.vmem_to_hbm [thread:$0]  %s135_s3, 32, %s272_s2, [#allocation4]  }
 0x205   :  { %205 = dma.done.wait [#allocation4], 32  }
 0x206   :  { %206 = vsyncadd [#allocation4], 4294967264 }
 0x207   :  { %145 = vsyncpa [#allocation3], 1 }
 0x208   :  { %146 = vsyncpa [#allocation4], 1 }

</bundles_post_ra>
